<compile_context>
chip_gen: v7x
topology: tpu7x:2x2x1
jax: 0.10.0
libtpu: 0.0.40
codegen_flags: <defaults>
</compile_context>

<pallas_src>
import jax
import jax.numpy as jnp
from jax.experimental import pallas as pl
from jax.experimental.pallas import tpu as pltpu


def _round_up(x, m):
    return ((x + m - 1) // m) * m


def decoder_kernel(x_ref, w1_ref, b1_ref, w2_ref, b2_ref, w3_ref, b3_ref, o_ref):
    """Fused 3-layer MLP forward for one batch tile (all weights VMEM-resident)."""
    compute_dtype = w1_ref.dtype  # f32 or bf16 MXU operands
    x = x_ref[...]

    # Linear 1 + ReLU (f32 accumulation on the MXU)
    h1 = jnp.dot(x, w1_ref[...], preferred_element_type=jnp.float32) + b1_ref[...]
    h1 = jnp.maximum(h1, 0.0).astype(compute_dtype)

    # Linear 2 + ReLU
    h2 = jnp.dot(h1, w2_ref[...], preferred_element_type=jnp.float32) + b2_ref[...]
    h2 = jnp.maximum(h2, 0.0).astype(compute_dtype)

    # Linear 3 + Sigmoid (output dim already padded to a lane-dense width)
    logits = jnp.dot(h2, w3_ref[...], preferred_element_type=jnp.float32) + b3_ref[...]
    o_ref[...] = jax.nn.sigmoid(logits).astype(o_ref.dtype)


def prepare_decoder_params(params, *, compute_dtype=jnp.float32):
    """One-time weight preparation (hoisted out of the per-call path).

    * weights cast to the MXU operand dtype (bf16 recommended on v6e/v7x,
      keep f32 on v5e which has no bf16 VPU),
    * last layer zero-padded to a multiple-of-128 output width so the kernel
      emits full-width (unmasked) vector stores,
    * biases kept f32 (added to the f32 MXU accumulator).
    """
    w1, b1, w2, b2, w3, b3 = (params[k] for k in ("w1", "b1", "w2", "b2", "w3", "b3"))
    latent_dim, hidden_dim = w1.shape
    output_dim = w3.shape[1]

    out_pad = (-output_dim) % 128
    if out_pad:
        w3 = jnp.pad(w3, ((0, 0), (0, out_pad)))
        b3 = jnp.pad(b3, ((0, 0), (0, out_pad)))

    prepared = {
        "w1": jnp.asarray(w1, compute_dtype), "b1": jnp.asarray(b1, jnp.float32),
        "w2": jnp.asarray(w2, compute_dtype), "b2": jnp.asarray(b2, jnp.float32),
        "w3": jnp.asarray(w3, compute_dtype), "b3": jnp.asarray(b3, jnp.float32),
    }
    meta = {
        "latent_dim": latent_dim,
        "hidden_dim": hidden_dim,
        "output_dim": output_dim,
        "padded_out": output_dim + out_pad,
    }
    return prepared, meta


def decoder_forward(x, prepared, meta, *, batch_tile=1024,
                    out_dtype=jnp.float32, slice_output=True):
    """x: [B, latent_dim]. prepared/meta: from prepare_decoder_params."""
    w1, b1, w2, b2, w3, b3 = (prepared[k] for k in ("w1", "b1", "w2", "b2", "w3", "b3"))
    B, latent_dim = x.shape
    assert latent_dim == meta["latent_dim"]
    hidden_dim = meta["hidden_dim"]
    output_dim = meta["output_dim"]
    padded_out = meta["padded_out"]
    compute_dtype = w1.dtype

    # ---- batch tiling: derive the tile from the step count (avoids near-2x
    # padding for B just above batch_tile); force >=2 steps so the "parallel"
    # axis can shard across both v7x TensorCores.
    batch_tile = max(8, _round_up(int(batch_tile), 8))
    n_steps = pl.cdiv(B, batch_tile)
    if n_steps == 1 and B >= 16:
        n_steps = 2
    tile = _round_up(pl.cdiv(B, n_steps), 8)
    Bp = n_steps * tile
    if Bp != B:
        x = jnp.pad(x, ((0, Bp - B), (0, 0)))
    x_c = x.astype(compute_dtype)

    # ---- constant (weight/bias) blocks: same block every step -> stays
    # resident in VMEM; single-buffer them so they don't cost 2x VMEM.
    def const_spec(arr):
        nd = arr.ndim
        index_map = lambda i, _nd=nd: (0,) * _nd
        try:
            return pl.BlockSpec(arr.shape, index_map, pipeline_mode=pl.Buffered(1))
        except Exception:  # older jax without pipeline_mode / Buffered
            return pl.BlockSpec(arr.shape, index_map)

    # ---- explicit scoped-VMEM budget (v5e default is only 16 MiB; v7x has
    # 64 MiB physical) -- weights single-buffered + double-buffered x/out tiles.
    weight_bytes = sum(int(a.size) * a.dtype.itemsize for a in (w1, b1, w2, b2, w3, b3))
    tile_bytes = (2 * tile * latent_dim * jnp.dtype(compute_dtype).itemsize
                  + 2 * tile * padded_out * jnp.dtype(out_dtype).itemsize
                  + 3 * tile * hidden_dim * 4)
    vmem_limit = int(min(max(2 * (weight_bytes + tile_bytes) + (4 << 20), 32 << 20),
                         64 << 20))

    out = pl.pallas_call(
        decoder_kernel,
        out_shape=jax.ShapeDtypeStruct((Bp, padded_out), out_dtype),
        grid_spec=pltpu.PrefetchScalarGridSpec(
            num_scalar_prefetch=0,
            grid=(n_steps,),
            in_specs=[
                pl.BlockSpec((tile, latent_dim), lambda i: (i, 0)),  # x tile
                const_spec(w1), const_spec(b1),
                const_spec(w2), const_spec(b2),
                const_spec(w3), const_spec(b3),
            ],
            out_specs=pl.BlockSpec((tile, padded_out), lambda i: (i, 0)),
        ),
        compiler_params=pltpu.CompilerParams(
            dimension_semantics=("parallel",),   # shards batch steps across TCs (v7x)
            vmem_limit_bytes=vmem_limit,
        ),
    )(x_c, w1, b1, w2, b2, w3, b3)

    # Only materialize the slice if padding was actually added; callers that
    # tolerate the padded buffer can pass slice_output=False and fuse it away.
    if slice_output and (Bp != B or padded_out != output_dim):
        out = out[:B, :output_dim]
    return out


def init_decoder_params(key, latent_dim, hidden_dim, output_dim):
    """Deterministic init mimicking nn.Linear's uniform(-1/sqrt(fan_in), 1/sqrt(fan_in))."""
    ks = jax.random.split(key, 6)

    def linear(kw, kb, fan_in, fan_out):
        bound = 1.0 / jnp.sqrt(fan_in)
        w = jax.random.uniform(kw, (fan_in, fan_out), jnp.float32, -bound, bound)
        b = jax.random.uniform(kb, (1, fan_out), jnp.float32, -bound, bound)
        return w, b

    w1, b1 = linear(ks[0], ks[1], latent_dim, hidden_dim)
    w2, b2 = linear(ks[2], ks[3], hidden_dim, hidden_dim)
    w3, b3 = linear(ks[4], ks[5], hidden_dim, output_dim)
    return {"w1": w1, "b1": b1, "w2": w2, "b2": b2, "w3": w3, "b3": b3}


def decoder_reference(x, params):
    """Pure-JAX reference for correctness check."""
    h = jnp.maximum(x @ params["w1"] + params["b1"], 0.0)
    h = jnp.maximum(h @ params["w2"] + params["b2"], 0.0)
    return jax.nn.sigmoid(h @ params["w3"] + params["b3"])


if __name__ == "__main__":
    latent_dim, hidden_dim, output_dim = 16, 32, 64

    key = jax.random.PRNGKey(0)
    k_params, k_x1, k_x2 = jax.random.split(key, 3)
    params = init_decoder_params(k_params, latent_dim, hidden_dim, output_dim)

    # one-time weight prep (cast + lane-dense pad) -- hoisted out of the call path
    prep_f32, meta = prepare_decoder_params(params, compute_dtype=jnp.float32)
    prep_bf16, meta_bf = prepare_decoder_params(params, compute_dtype=jnp.bfloat16)

    # --- small batch: forces 2 grid steps (v7x megacore path), f32, tight tol ---
    batch = 16
    x = jax.random.normal(k_x1, (batch, latent_dim), jnp.float32)
    out = jax.block_until_ready(decoder_forward(x, prep_f32, meta))
    ref = decoder_reference(x, params)
    assert out.shape == (batch, output_dim)
    assert jnp.allclose(out, ref, atol=1e-5, rtol=1e-5), "f32 mismatch vs JAX reference"

    # --- ragged batch (not a tile multiple): multi-step tiled grid, f32 ---
    batch2 = 250
    x2 = jax.random.normal(k_x2, (batch2, latent_dim), jnp.float32)
    out2 = jax.block_until_ready(decoder_forward(x2, prep_f32, meta, batch_tile=64))
    ref2 = decoder_reference(x2, params)
    assert out2.shape == (batch2, output_dim)
    assert jnp.allclose(out2, ref2, atol=1e-5, rtol=1e-5), "tiled f32 mismatch"

    # --- bf16 MXU operands (v6e/v7x path), f32 accumulation; loose tolerance ---
    out_bf = jax.block_until_ready(decoder_forward(x2, prep_bf16, meta_bf, batch_tile=64))
    assert jnp.max(jnp.abs(out_bf - ref2)) < 5e-2, "bf16 compute mismatch"

    # --- bf16 output writeback (halves output HBM traffic) ---
    out_bf_o = jax.block_until_ready(
        decoder_forward(x2, prep_bf16, meta_bf, batch_tile=64, out_dtype=jnp.bfloat16))
    assert out_bf_o.dtype == jnp.bfloat16
    assert jnp.max(jnp.abs(out_bf_o.astype(jnp.float32) - ref2)) < 5e-2, "bf16 out mismatch"

    print("KERNEL_OK")
</pallas_src>

<mosaic_0001>
module attributes {stable_mosaic.version = 11 : i64} {
  func.func @decoder_kernel(%arg0: i32, %arg1: memref<8x16xf32, #tpu.memory_space<vmem>>, %arg2: memref<16x32xf32, #tpu.memory_space<vmem>>, %arg3: memref<1x32xf32, #tpu.memory_space<vmem>>, %arg4: memref<32x32xf32, #tpu.memory_space<vmem>>, %arg5: memref<1x32xf32, #tpu.memory_space<vmem>>, %arg6: memref<32x128xf32, #tpu.memory_space<vmem>>, %arg7: memref<1x128xf32, #tpu.memory_space<vmem>>, %arg8: memref<8x128xf32, #tpu.memory_space<vmem>>) attributes {dimension_semantics = [#tpu.dimension_semantics<parallel>], iteration_bounds = array<i64: 2>, scalar_prefetch = 0 : i64, scratch_operands = 0 : i64, tpu.core_type = #tpu.core_type<tc>, window_params = [{transform_indices = @transform_0, window_bounds = array<i64: 8, 16>}, {pipeline_mode = #tpu.pipeline_mode<synchronous>, transform_indices = @transform_1, window_bounds = array<i64: 16, 32>}, {pipeline_mode = #tpu.pipeline_mode<synchronous>, transform_indices = @transform_2, window_bounds = array<i64: 1, 32>}, {pipeline_mode = #tpu.pipeline_mode<synchronous>, transform_indices = @transform_3, window_bounds = array<i64: 32, 32>}, {pipeline_mode = #tpu.pipeline_mode<synchronous>, transform_indices = @transform_4, window_bounds = array<i64: 1, 32>}, {pipeline_mode = #tpu.pipeline_mode<synchronous>, transform_indices = @transform_5, window_bounds = array<i64: 32, 128>}, {pipeline_mode = #tpu.pipeline_mode<synchronous>, transform_indices = @transform_6, window_bounds = array<i64: 1, 128>}, {transform_indices = @transform_7, window_bounds = array<i64: 8, 128>}]} {
    %c0 = arith.constant 0 : index
    %c0_0 = arith.constant 0 : index
    %0 = vector.load %arg1[%c0, %c0_0] : memref<8x16xf32, #tpu.memory_space<vmem>>, vector<8x16xf32>
    %c0_1 = arith.constant 0 : index
    %c0_2 = arith.constant 0 : index
    %1 = vector.load %arg2[%c0_1, %c0_2] : memref<16x32xf32, #tpu.memory_space<vmem>>, vector<16x32xf32>
    %cst = arith.constant dense<0.000000e+00> : vector<8x32xf32>
    %2 = tpu.matmul %0, %1, %cst {dimension_numbers = #tpu.dot_dimension_numbers<[1], [0], [0], [1], [0, 0, 1, 1], [], []>} : vector<8x16xf32>, vector<16x32xf32>, vector<8x32xf32> -> vector<8x32xf32>
    %c0_3 = arith.constant 0 : index
    %c0_4 = arith.constant 0 : index
    %3 = vector.load %arg3[%c0_3, %c0_4] : memref<1x32xf32, #tpu.memory_space<vmem>>, vector<1x32xf32>
    %4 = vector.broadcast %3 : vector<1x32xf32> to vector<8x32xf32>
    %5 = arith.addf %2, %4 : vector<8x32xf32>
    %cst_5 = arith.constant 0.000000e+00 : f32
    %6 = vector.broadcast %cst_5 : f32 to vector<8x32xf32>
    %7 = arith.maximumf %5, %6 : vector<8x32xf32>
    %c0_6 = arith.constant 0 : index
    %c0_7 = arith.constant 0 : index
    %8 = vector.load %arg4[%c0_6, %c0_7] : memref<32x32xf32, #tpu.memory_space<vmem>>, vector<32x32xf32>
    %cst_8 = arith.constant dense<0.000000e+00> : vector<8x32xf32>
    %9 = tpu.matmul %7, %8, %cst_8 {dimension_numbers = #tpu.dot_dimension_numbers<[1], [0], [0], [1], [0, 0, 1, 1], [], []>} : vector<8x32xf32>, vector<32x32xf32>, vector<8x32xf32> -> vector<8x32xf32>
    %c0_9 = arith.constant 0 : index
    %c0_10 = arith.constant 0 : index
    %10 = vector.load %arg5[%c0_9, %c0_10] : memref<1x32xf32, #tpu.memory_space<vmem>>, vector<1x32xf32>
    %11 = vector.broadcast %10 : vector<1x32xf32> to vector<8x32xf32>
    %12 = arith.addf %9, %11 : vector<8x32xf32>
    %cst_11 = arith.constant 0.000000e+00 : f32
    %13 = vector.broadcast %cst_11 : f32 to vector<8x32xf32>
    %14 = arith.maximumf %12, %13 : vector<8x32xf32>
    %c0_12 = arith.constant 0 : index
    %c0_13 = arith.constant 0 : index
    %15 = vector.load %arg6[%c0_12, %c0_13] : memref<32x128xf32, #tpu.memory_space<vmem>>, vector<32x128xf32>
    %cst_14 = arith.constant dense<0.000000e+00> : vector<8x128xf32>
    %16 = tpu.matmul %14, %15, %cst_14 {dimension_numbers = #tpu.dot_dimension_numbers<[1], [0], [0], [1], [0, 0, 1, 1], [], []>} : vector<8x32xf32>, vector<32x128xf32>, vector<8x128xf32> -> vector<8x128xf32>
    %c0_15 = arith.constant 0 : index
    %c0_16 = arith.constant 0 : index
    %17 = vector.load %arg7[%c0_15, %c0_16] : memref<1x128xf32, #tpu.memory_space<vmem>>, vector<1x128xf32>
    %18 = vector.broadcast %17 : vector<1x128xf32> to vector<8x128xf32>
    %19 = arith.addf %16, %18 : vector<8x128xf32>
    %20 = arith.negf %19 : vector<8x128xf32>
    %21 = math.exp %20 : vector<8x128xf32>
    %cst_17 = arith.constant 1.000000e+00 : f32
    %22 = vector.broadcast %cst_17 : f32 to vector<8x128xf32>
    %23 = arith.addf %22, %21 : vector<8x128xf32>
    %24 = arith.divf %22, %23 : vector<8x128xf32>
    %c0_18 = arith.constant 0 : index
    %c0_19 = arith.constant 0 : index
    %25 = vector.load %arg8[%c0_18, %c0_19] : memref<8x128xf32, #tpu.memory_space<vmem>>, vector<8x128xf32>
    tpu.vector_store %arg8[%c0_18, %c0_19], %24 {strides = array<i32>} : memref<8x128xf32, #tpu.memory_space<vmem>>, vector<8x128xf32>,
    return
  }
  func.func @transform_0(%arg0: i32) -> (i32, i32) {
    %c0_i32 = arith.constant 0 : i32
    %c0_i32_0 = arith.constant 0 : i32
    return %arg0, %c0_i32 : i32, i32
  }
  func.func @transform_1(%arg0: i32) -> (i32, i32) {
    %c0_i32 = arith.constant 0 : i32
    %c0_i32_0 = arith.constant 0 : i32
    %c0_i32_1 = arith.constant 0 : i32
    return %c0_i32, %c0_i32_0 : i32, i32
  }
  func.func @transform_2(%arg0: i32) -> (i32, i32) {
    %c0_i32 = arith.constant 0 : i32
    %c0_i32_0 = arith.constant 0 : i32
    %c0_i32_1 = arith.constant 0 : i32
    return %c0_i32, %c0_i32_0 : i32, i32
  }
  func.func @transform_3(%arg0: i32) -> (i32, i32) {
    %c0_i32 = arith.constant 0 : i32
    %c0_i32_0 = arith.constant 0 : i32
    %c0_i32_1 = arith.constant 0 : i32
    return %c0_i32, %c0_i32_0 : i32, i32
  }
  func.func @transform_4(%arg0: i32) -> (i32, i32) {
    %c0_i32 = arith.constant 0 : i32
    %c0_i32_0 = arith.constant 0 : i32
    %c0_i32_1 = arith.constant 0 : i32
    return %c0_i32, %c0_i32_0 : i32, i32
  }
  func.func @transform_5(%arg0: i32) -> (i32, i32) {
    %c0_i32 = arith.constant 0 : i32
    %c0_i32_0 = arith.constant 0 : i32
    %c0_i32_1 = arith.constant 0 : i32
    return %c0_i32, %c0_i32_0 : i32, i32
  }
  func.func @transform_6(%arg0: i32) -> (i32, i32) {
    %c0_i32 = arith.constant 0 : i32
    %c0_i32_0 = arith.constant 0 : i32
    %c0_i32_1 = arith.constant 0 : i32
    return %c0_i32, %c0_i32_0 : i32, i32
  }
  func.func @transform_7(%arg0: i32) -> (i32, i32) {
    %c0_i32 = arith.constant 0 : i32
    %c0_i32_0 = arith.constant 0 : i32
    return %arg0, %c0_i32 : i32, i32
  }
}

</mosaic_0001>

<bundles_post_ra>
// kernel: tpu_custom_call.1
= control target key start
LH: loop header
LB: loop body
LE: loop exit
PB: predicated region body
PF: predicated region fallthrough
CT: control target
= control target key end

     0   :  { %12 = vsyncpa [#allocation3], 0  ;;  %s1400_s0 = inlined_call_operand.hbm [shape: f32[16,16], index: 0, kind: input, shape index: {}]   ;;  %s1401_s1 = inlined_call_operand.hbm [shape: f32[16,32], index: 1, kind: input, shape index: {}]   ;;  %s1402_s2 = inlined_call_operand.vmem [shape: f32[1,32], index: 2, kind: input, shape index: {}]   ;;  %s1403_s3 = inlined_call_operand.hbm [shape: f32[32,32], index: 3, kind: input, shape index: {}]   ;;  %s1404_s4 = inlined_call_operand.vmem [shape: f32[1,32], index: 4, kind: input, shape index: {}]   ;;  %s1405_s5 = inlined_call_operand.hbm [shape: f32[32,128], index: 5, kind: input, shape index: {}]   ;;  %s1406_s6 = inlined_call_operand.vmem [shape: f32[1,128], index: 6, kind: input, shape index: {}]   ;;  %s1407_s7 = inlined_call_operand.hbm [shape: f32[16,128], index: 7, kind: output, shape index: {}]  }
   0x1   :  { %14 = vsyncpa [#allocation3 + $0x1], 0 }
   0x2   :  { %15 = vsyncpa [#allocation6], 0 }
   0x3   :  { %16 = vsyncpa [#allocation9], 0 }
   0x4   :  { %17 = vsyncpa [#allocation4], 0 }
   0x5   :  { %19 = vsyncpa [#allocation4 + $0x1], 0  ;;  %s1121_s24 = smov 0   ;;  %s1123_s25 = smov 0  }
   0x6   :  { %s1125_s26 = smov 0   ;;  %s1127_s27 = smov 0  }
   0x7 LB: > { %s1142_s28 = sadd.s32 4294967295, %s1069_s27   ;;  %s713_s29 = sadd.s32 4294967294, %s1069_s27   ;;  %s1069_s27 = sphi %s1127_s27, %s1433_s27   ;;  %s1065_s26 = sphi %s1125_s26, %s1432_s26   ;;  %s1061_s25 = sphi %s1123_s25, %s1431_s25   ;;  %s1057_s24 = sphi %s1121_s24, %s1430_s24  }
   0x8   : > { %p45_p0 = scmp.ne.s32.totalorder %s1061_s25, %s1057_s24  ;;  %p1408_p1 = scmp.eq.s32.totalorder %s1142_s28, 0 }
   0x9   : > { %p201_p3 = scmp.eq.s32.totalorder %s713_s29, 1  ;;  %p714_p5 = scmp.ge.s32.totalorder %s1069_s27, 1 }
   0xa   : > { %p1151_p4 = por %p1408_p1, %p45_p0  ;;  %p208_p7 = scmp.lt.s32.totalorder %s1069_s27, 3 }
   0xb   : > { %p1156_p6 = por %p201_p3, %p45_p0  ;;  %s1071_s10 = smov [#allocation5]  }
   0xc   : > { %s1412_s30 = scalar_select %p1151_p4, 1, 0 }
   0xd   : > { %s1413_s8 = scalar_select %p1156_p6, 1, 0 }
   0xe   : > { %p1161_p8 = pnand %p714_p5, %p208_p7  ;;  %s220_s11 = sshll.u32 %s1071_s10, 4  ;;  %s1165_s11 = int_to_ptr.vmem [resolvable:$true] %s220_s11 }
   0xf   : > { %1414 = sst [smem:[#allocation15_spill]] %s1413_s8  ;;  %s1072_s13 = smov [#allocation7]  }
  0x10   : > { %s1415_s9 = scalar_select %p1161_p8, 1, 0 }
  0x11   : > { %p811_p9 = pneg %p1161_p8  ;;  %s236_s14 = sshll.u32 %s1072_s13, 4  ;;  %s1176_s14 = int_to_ptr.vmem [resolvable:$true] %s236_s14 }
  0x12   : > { %s1073_s15 = smov [#allocation8]   ;;  %s881_s19 = scalar_lea.hbm %s1401_s1, 256 }
  0x13   : > { %p1172_p11 = pnand %p811_p9, %p1408_p1  ;;  %s1178_s16 = sshll.u32 %s1073_s15, 4  ;;  %s253_s16 = int_to_ptr.vmem [resolvable:$true] %s1178_s16 }
  0x14   : > { %p882_p12 = scmp.ne.s32.totalorder %s1401_s1, %s881_s19  ;;  %p888_p5 = scmp.lt.u32.totalorder %s881_s19, %s1401_s1 }
  0x15   : > { %p1188_p13 = pneg %p1172_p11 }
  0x17   : > { %p884_p0 = pnand %p1188_p13, %p882_p12 }
  0x19   : > { %p885_p3 = pneg %p884_p0 }
  0x1b   : > { %p890_p7 = pnand %p888_p5, %p885_p3 }
  0x1d   : > { %893 = shalt.err (!%p890_p7)
}
  0x1e   : > { %s894_s10 = scalar_lea.vmem %s1165_s11, 256  ;;  %p902_p2 = scmp.lt.s32.totalorder %s1165_s11, %s1165_s11 }
  0x1f   : > { %p895_p9 = scmp.ne.s32.totalorder %s1165_s11, %s894_s10  ;;  %p903_p6 = scmp.lt.s32.totalorder %s894_s10, %s894_s10 }
  0x21   : > { %p897_p10 = pnand %p895_p9, %p1188_p13  ;;  %p904_p12 = por %p903_p6, %p902_p2 }
  0x23   : > { %p898_p1 = pneg %p897_p10 }
  0x25   : > { %p905_p0 = pnand %p904_p12, %p898_p1 }
  0x27   : > { %908 = shalt.err (!%p905_p0)
}
  0x28   : > { %s1074_s13 = smov 128   ;;  %s1075_s15 = smov 8  }
  0x29   : > { %814 = dma.hbm_to_vmem [thread:$0]  (!%p1172_p11), %s1401_s1, 256, %s1165_s11, [#allocation6], %s1074_s13, %s1074_s13, %s1075_s15  }
  0x2a   : > { %s909_s21 = scalar_lea.hbm %s1403_s3, 512 }
  0x2b   : > { %p910_p1 = scmp.ne.s32.totalorder %s1403_s3, %s909_s21  ;;  %p916_p10 = scmp.lt.u32.totalorder %s909_s21, %s1403_s3 }
  0x2d   : > { %p912_p2 = pnand %p910_p1, %p1188_p13 }
  0x2f   : > { %p913_p6 = pneg %p912_p2 }
  0x31   : > { %p918_p3 = pnand %p916_p10, %p913_p6 }
  0x33   : > { %921 = shalt.err (!%p918_p3)
}
  0x34   : > { %s922_s11 = scalar_lea.vmem %s1176_s14, 512  ;;  %p930_p12 = scmp.lt.s32.totalorder %s1176_s14, %s1176_s14 }
  0x35   : > { %p923_p5 = scmp.ne.s32.totalorder %s1176_s14, %s922_s11  ;;  %p931_p0 = scmp.lt.s32.totalorder %s922_s11, %s922_s11 }
  0x37   : > { %p925_p7 = pnand %p923_p5, %p1188_p13  ;;  %p932_p1 = por %p931_p0, %p930_p12 }
  0x39   : > { %p926_p9 = pneg %p925_p7 }
  0x3b   : > { %p933_p2 = pnand %p932_p1, %p926_p9 }
  0x3d   : > { %936 = shalt.err (!%p933_p2)
}
  0x3e   : > { %817 = dma.hbm_to_vmem [thread:$0]  (!%p1172_p11), %s1403_s3, 512, %s1176_s14, [#allocation6], %s1074_s13, %s1074_s13, %s1075_s15  }
  0x3f   : > { %s937_s20 = scalar_lea.hbm %s1405_s5, 512 }
  0x40   : > { %p938_p6 = scmp.ne.s32.totalorder %s1405_s5, %s937_s20  ;;  %p944_p5 = scmp.lt.u32.totalorder %s937_s20, %s1405_s5 }
  0x42   : > { %p940_p10 = pnand %p938_p6, %p1188_p13 }
  0x44   : > { %p941_p3 = pneg %p940_p10 }
  0x46   : > { %p946_p7 = pnand %p944_p5, %p941_p3 }
  0x48   : > { %949 = shalt.err (!%p946_p7)
}
  0x49   : > { %s950_s11 = scalar_lea.vmem %s253_s16, 512  ;;  %p958_p1 = scmp.lt.s32.totalorder %s253_s16, %s253_s16 }
  0x4a   : > { %p951_p9 = scmp.ne.s32.totalorder %s253_s16, %s950_s11  ;;  %p959_p2 = scmp.lt.s32.totalorder %s950_s11, %s950_s11 }
  0x4c   : > { %p953_p12 = pnand %p951_p9, %p1188_p13  ;;  %p960_p4 = por %p959_p2, %p958_p1 }
  0x4e   : > { %p954_p0 = pneg %p953_p12 }
  0x50   : > { %p961_p8 = pnand %p960_p4, %p954_p0 }
  0x52   : > { %964 = shalt.err (!%p961_p8)
}
  0x53   : > { %820 = dma.hbm_to_vmem [thread:$0]  (!%p1172_p11), %s1405_s5, 512, %s253_s16, [#allocation9], %s1074_s13, %s1074_s13, %s1075_s15  }
  0x54   : > { %s1261_s22 = sadd.s32 1, %s1069_s27   ;;  %s32_s17 = sadd.s32 1, %s1065_s26 }
  0x55   : > { %s29_s12 = ssub.s32 %s1069_s27, %s1261_s22  ;;  %p39_p8 = scmp.ne.s32.totalorder %s1065_s26, %s1061_s25 }
  0x56   : > { %p30_p4 = scmp.eq.s32.totalorder %s29_s12, 0  ;;  %p40_p13 = scmp.eq.s32.totalorder %s1069_s27, 0 }
  0x57   : > { %p832_p6 = scmp.lt.s32.totalorder %s1069_s27, 2  ;;  %p1418_p3 = scmp.eq.s32.totalorder %s1142_s28, 1 }
  0x58   : > { %s1271_s18 = scalar_select %p30_p4, %s1065_s26, %s32_s17  }
  0x59   : > { %p41_p10 = por %p40_p13, %p39_p8  ;;  %p1275_p5 = por %p1418_p3, %p39_p8 }
  0x5a   : > { %s269_s20 = sand.u32 1, %s1065_s26   ;;  %s720_s21 = sshll.u32 %s1069_s27, 7 }
  0x5b   : > { %s719_s16 = sshll.u32 %s269_s20, 3  ;;  %s1284_s23 = scalar_lea.hbm %s1400_s0, %s720_s21 }
  0x5c   : > { %s273_s29 = scalar_lea.vmem [#allocation2], %s719_s16  ;;  %p1286_p11 = pnand %p832_p6, %p41_p10 }
  0x5d   : > { %s280_s10 = sshll.u32 %s273_s29, 4  ;;  %s270_s14 = scalar_lea.sflag [#allocation3], %s269_s20  ;;  %s1290_s10 = int_to_ptr.vmem [resolvable:$true] %s280_s10 }
  0x5e   : > { %s965_s8 = scalar_lea.hbm %s1284_s23, 128  ;;  %p967_p9 = pneg %p1286_p11 }
  0x5f   : > { %p966_p7 = scmp.ne.s32.totalorder %s1284_s23, %s965_s8  ;;  %s970_s21 = scalar_lea.hbm %s1400_s0, 256 }
  0x60   : > { %p971_p1 = scmp.lt.u32.totalorder %s1284_s23, %s1400_s0  ;;  %p972_p2 = scmp.lt.u32.totalorder %s970_s21, %s965_s8 }
  0x61   : > { %p968_p12 = pnand %p967_p9, %p966_p7  ;;  %p974_p8 = scmp.lt.u32.totalorder %s965_s8, %s1284_s23 }
  0x62   : > { %p973_p4 = por %p972_p2, %p971_p1 }
  0x63   : > { %p969_p0 = pneg %p968_p12 }
  0x64   : > { %p975_p13 = por %p974_p8, %p973_p4 }
  0x66   : > { %p976_p6 = pnand %p975_p13, %p969_p0 }
  0x68   : > { %979 = shalt.err (!%p976_p6)
}
  0x69   : > { %s980_s20 = scalar_lea.vmem %s1290_s10, 128  ;;  %s1076_s15 = smov [#allocation2]  }
  0x6a   : > { %p981_p10 = scmp.ne.s32.totalorder %s1290_s10, %s980_s20  ;;  %s985_s29 = sshll.u32 %s1076_s15, 4  ;;  %s986_s29 = int_to_ptr.vmem [resolvable:$false] %s985_s29 }
  0x6b   : > { %s987_s12 = scalar_lea.vmem %s986_s29, 256  ;;  %p988_p12 = scmp.lt.s32.totalorder %s1290_s10, %s986_s29 }
  0x6c   : > { %p983_p3 = pnand %p981_p10, %p967_p9  ;;  %p989_p1 = scmp.lt.s32.totalorder %s987_s12, %s980_s20 }
  0x6e   : > { %p984_p7 = pneg %p983_p3  ;;  %p990_p2 = por %p989_p1, %p988_p12 }
  0x70   : > { %p991_p4 = pnand %p990_p2, %p984_p7 }
  0x72   : > { %994 = shalt.err (!%p991_p4)
}
  0x73   : > { %824 = dma.hbm_to_vmem [thread:$0]  (!%p1286_p11), %s1284_s23, 128, %s1290_s10, %s270_s14  }
  0x74   : > { %p1421_p0 = scmp.ne.s32.totalorder %s1415_s9, 0 }
  0x75   : > { %s1320_s8 = sand.u32 (!%p1421_p0), 1, %s1061_s25   ;;  %p1422_p9 = scmp.ne.s32.totalorder (!%p1421_p0), %s1412_s30, 0 }
  0x76   : > { %289 = sbr.rel (%p1421_p0) target bundleno = 826 (0x33a), region = 48  ;;  %s722_s17 = sshll.u32 (!%p1421_p0), %s1320_s8, 3 }
  0x77   : > { %s292_s21 = scalar_lea.sflag (!%p1421_p0), [#allocation3], %s1320_s8  ;;  %s295_s16 = scalar_lea.vmem (!%p1421_p0), [#allocation2], %s722_s17 }
  0x7d   : > { %1040 = dma.done.wait (%p1422_p9), %s292_s21, 128  }
  0x7e   : > { %1042 = vsyncadd (%p1422_p9), %s292_s21, 4294967168  ;;  %p1423_p11 = scmp.eq.s32.totalorder %s1142_s28, 0 }
  0x80   : > { %1044 = dma.done.wait (%p1423_p11), [#allocation6], 768   ;;  %p1424_p8 = pmov %p1423_p11 }
  0x82   : > { %1046 = vsyncadd (%p1424_p8), [#allocation6], 4294966528  ;;  %p1425_p13 = pmov %p1424_p8 }
  0x83   : > { %p1426_p6 = pmov %p1424_p8 }
  0x84   : > { %1048 = dma.done.wait (%p1425_p13), [#allocation9], 512  }
  0x85   : > { %1050 = vsyncadd (%p1426_p6), [#allocation9], 4294966784  ;;  %v1077_v0 = vmov 0.0|0.0   ;;  %vm1078_vm0 = vmmov 0   ;;  %v1079_v1 = vmov 0.0   ;;  %v339_v2 = vld [vmem:[#allocation5] sm:$0xff] }
  0x86   : > { %780 = vmatprep.subr.bf16.mxu0 %v1077_v0  ;;  %755 = vmatprep.mubr.msk.f32.mxu0 %vm1078_vm0, %v1079_v1  ;;  %v340_v3 = vld [vmem:[#allocation5 + $0x8] sm:$0xff]  ;;  %v423_v5 = vld [vmem:[#allocation7] sm:$0xff]  ;;  %v424_v6 = vld [vmem:[#allocation7 + $0x8] sm:$0xff]  ;;  %vm348_vm1 = vcmask 130048   ;;  %vm434_vm2 = vcmask 261120   ;;  %s735_s13 = sshll.u32 %s1142_s28, 7 }
  0x87   : > { %783 = vmatprep.subr.bf16.mxu1 %v1077_v0  ;;  %766 = vmatprep.mubr.msk.f32.mxu1 %vm1078_vm0, %v1079_v1  ;;  %v781_v4 = vpack.c.bf16 %v340_v3, %v339_v2  ;;  %v784_v7 = vpack.c.bf16 %v424_v6, %v423_v5  ;;  %v338_v8 = vld [vmem:[%s295_s16] sm:$0xff]  ;;  %v425_v9 = vld [vmem:[#allocation7 + $0x10] sm:$0xff]  ;;  %v426_v10 = vld [vmem:[#allocation7 + $0x18] sm:$0xff]  ;;  %s337_s20 = scalar_lea.vmem [#allocation10], %s722_s17  ;;  %s1356_s21 = scalar_lea.hbm %s1407_s7, %s735_s13 }
  0x88   : > { %v787_v11 = vpack.c.bf16 %v426_v10, %v425_v9  ;;  %v509_v12 = vld [vmem:[#allocation8] sm:$0xff]  ;;  %v510_v13 = vld [vmem:[#allocation8 + $0x8] sm:$0xff]  ;;  %v511_v20 = vld [vmem:[#allocation8 + $0x10] sm:$0xff]  ;;  %s614_s15 = sshll.u32 %s337_s20, 4  ;;  %s601_s16 = scalar_lea.sflag [#allocation4], %s1320_s8  ;;  %s1358_s15 = int_to_ptr.vmem [resolvable:$true] %s614_s15 }
  0x89   : > { %782 = vmatpush3.bf16.msra.mxu0 %v781_v4  ;;  %785 = vmatpush3.bf16.msra.mxu1 %v784_v7  ;;  %v790_v14 = vpack.c.bf16 %v510_v13, %v509_v12  ;;  %v727_v15 = vld [vmem:[%s1402_s2] ss:$0 sm:$0xff]  ;;  %v512_v21 = vld [vmem:[#allocation8 + $0x18] sm:$0xff]  ;;  %s995_s30 = scalar_lea.vmem %s1358_s15, 128  ;;  %s1080_s28 = smov [#allocation10]  }
  0x8a   : > { %789 = vmatprep.subr.bf16.mxu0 %v1077_v0  ;;  %786 = vmatprep.subr.bf16.mxu1 %v1077_v0  ;;  %v793_v22 = vpack.c.bf16 %v512_v21, %v511_v20  ;;  %v729_v23 = vld [vmem:[%s1404_s4] ss:$0 sm:$0xff]  ;;  %p996_p10 = scmp.ne.s32.totalorder %s1358_s15, %s995_s30  ;;  %s999_s17 = sshll.u32 %s1080_s28, 4  ;;  %s1000_s17 = int_to_ptr.vmem [resolvable:$false] %s999_s17 }
  0x8b   : > { %v731_v28 = vld [vmem:[%s1406_s6] ss:$0 sm:$0xff]  ;;  %s1001_s9 = scalar_lea.vmem %s1000_s17, 256  ;;  %p1002_p12 = scmp.lt.s32.totalorder %s1358_s15, %s1000_s17 }
  0x8c   : > { %756 = vmatmul.mubr.msk.f32.vlgmr.msra.gmra.mrb[0].mxu0 %vm348_vm1, %v338_v8  ;;  %p997_p3 = pnand %p996_p10, %p1275_p5  ;;  %p1003_p1 = scmp.lt.s32.totalorder %s1001_s9, %s995_s30 }
  0x8d   : > { %777 = vmatprep.mubr.msk.f32.mxu0 %vm1078_vm0, %v1079_v1  ;;  %788 = vmatpush3.bf16.msra.mxu1 %v787_v11 }
  0x8e   : > { %791 = vmatpush3.bf16.msra.mxu0 %v790_v14  ;;  %p998_p7 = pneg %p997_p3  ;;  %p1004_p2 = por %p1003_p1, %p1002_p12 }
  0x8f   : > { %792 = vmatprep.subr.bf16.mxu0 %v1077_v0 }
  0x90   : > { %p1005_p4 = pnand %p1004_p2, %p998_p7 }
  0x92   : > { %794 = vmatpush3.bf16.msra.mxu0 %v793_v22 }
 0x15f   : > { %v418_v16 = vpop.f32.mrb[0].mxu0 }
 0x160   : > { %v419_v17 = vadd.f32 %v727_v15, %v418_v16  ;;  %v757_v18 = vpop.f32.mrb[1].mxu0 }
 0x162   : > { %v422_v19 = vmax.f32 %v419_v17, 0.0 }
 0x164   : > { %767 = vmatmul.mubr.msk.f32.vlgmr.msra.gmra.mrb[0].mxu1 %vm434_vm2, %v422_v19 }
 0x237   : > { %v504_v24 = vpop.f32.mrb[0].mxu1 }
 0x238   : > { %v505_v25 = vadd.f32 %v729_v23, %v504_v24  ;;  %v768_v26 = vpop.f32.mrb[1].mxu1 }
 0x23a   : > { %v508_v27 = vmax.f32 %v505_v25, 0.0 }
 0x23c   : > { %778 = vmatmul.mubr.msk.f32.vlgmr.msra.gmra.mrb[2].mxu0 %vm434_vm2, %v508_v27 }
 0x30f   : > { %v589_v29 = vpop.f32.mrb[2].mxu0 }
 0x310   : > { %v590_v30 = vadd.f32 %v731_v28, %v589_v29  ;;  %v779_v31 = vpop.f32.mrb[3].mxu0 }
 0x312   : > { %v733_v32 = vmul.f32 -1.442695, %v590_v30 }
 0x314   : > { %877 = vpow2.f32 %v733_v32 }
 0x31e   : > { %v878_v33 = vpop.eup %877 }
 0x31f   : > { %v596_v34 = vadd.f32 1.0, %v878_v33 }
 0x321   : > { %879 = vrcp.f32 %v596_v34 }
 0x32b   : > { %v880_v35 = vpop.eup %879 }
 0x32c   : > { %599 = vst [vmem:[%s337_s20] sm:$0xff] %v880_v35 }
 0x32d   : > { %1008 = shalt.err (!%p1005_p4)
}
 0x32e   : > { %s1009_s8 = scalar_lea.hbm %s1356_s21, 128  ;;  %s1013_s11 = scalar_lea.hbm %s1407_s7, 256 }
 0x32f   : > { %p1010_p0 = scmp.ne.s32.totalorder %s1356_s21, %s1009_s8  ;;  %p1014_p8 = scmp.lt.u32.totalorder %s1356_s21, %s1407_s7 }
 0x330   : > { %p1015_p13 = scmp.lt.u32.totalorder %s1013_s11, %s1009_s8  ;;  %p1017_p10 = scmp.lt.u32.totalorder %s1009_s8, %s1356_s21 }
 0x331   : > { %p1011_p9 = pnand %p1010_p0, %p1275_p5 }
 0x332   : > { %p1016_p6 = por %p1015_p13, %p1014_p8 }
 0x333   : > { %p1012_p11 = pneg %p1011_p9 }
 0x334   : > { %p1018_p3 = por %p1017_p10, %p1016_p6 }
 0x336   : > { %p1019_p7 = pnand %p1018_p3, %p1012_p11 }
 0x338   : > { %1022 = shalt.err (!%p1019_p7)
}
 0x339   : > { %809 = dma.vmem_to_hbm [thread:$0]  (%p1275_p5), %s1358_s15, 128, %s1356_s21, %s601_s16  }
 0x33a PF: > { %s1427_s20 = sld [smem:[#allocation15_spill]]  ;;  %s626_s29 = sand.u32 1, %s1057_s24  }
 0x33b   : > { %p1429_p1 = scmp.ge.s32.totalorder %s1069_s27, 2  ;;  %s627_s12 = scalar_lea.sflag [#allocation4], %s626_s29 }
 0x340   : > { %p1428_p12 = scmp.ne.s32.totalorder %s1427_s20, 0 }
 0x342   : > { %p826_p2 = pnand %p1429_p1, %p1428_p12 }
 0x344   : > { %1052 = dma.done.wait (!%p826_p2), %s627_s12, 128  }
 0x345   : > { %1054 = vsyncadd (!%p826_p2), %s627_s12, 4294967168  ;;  %p22_p4 = scmp.ge.s32.totalorder %s1261_s22, 4   ;;  %s1430_s24 = smov %s1061_s25 }
 0x346   : > { %s1431_s25 = smov %s1065_s26  ;;  %s1432_s26 = smov %s1271_s18 }
 0x347   : > { %s1433_s27 = smov %s1261_s22  ;;  %24 = sbr.rel (!%p22_p4) target bundleno = 7 (0x7), region = 105 }
 0x34e   :  { %632 = vsyncpa [#allocation3], 1 }
 0x34f   :  { %634 = vsyncpa [#allocation3 + $0x1], 1 }
 0x350   :  { %635 = vsyncpa [#allocation6], 1 }
 0x351   :  { %636 = vsyncpa [#allocation9], 1 }
 0x352   :  { %637 = vsyncpa [#allocation4], 1 }
 0x353   :  { %639 = vsyncpa [#allocation4 + $0x1], 1 }

</bundles_post_ra>
